<compile_context>
chip_gen: v5e
topology: v5e:2x2
jax: 0.10.0
libtpu: 0.0.40
codegen_flags: <defaults>
</compile_context>

<pallas_src>
import functools

import jax
import jax.numpy as jnp
from jax import lax
from jax.experimental import pallas as pl
from jax.experimental.pallas import tpu as pltpu

# Block(kernel_size=3, in_size=4, expand_size=8, out_size=8,
#       nolinear=nn.ReLU(), semodule=None, stride=1)
K = 3
CIN = 4
CEXP = 8
COUT = 8
PAD = K // 2
BN_EPS = 1e-5

assert CEXP == COUT  # lane-interleaved layout assumes equal expand/out groups
# TODO(synk): semodule=None and stride=1 in this Block config; no SE / strided path.


# ---------------- in-kernel helpers ----------------

def _shift_rows(a, k, size):
    """b[i, :] = a[(i + k) % size, :]  (sublane rotation, XLU)."""
    k = k % size
    if k == 0:
        return a
    return pltpu.roll(a, shift=size - k, axis=0)


def _shift_lanes(a, k, size):
    """b[..., j] = a[..., (j + k) % size]  (lane rotation, XLU)."""
    k = k % size
    if k == 0:
        return a
    return pltpu.roll(a, shift=size - k, axis=a.ndim - 1)


# ---------------- fused kernel ----------------

def _block_kernel(nb, H, W, x_ref, wmat_ref, cst_ref, o_ref, y1_ref, y2_ref):
    """One batch tile of `nb` images.

    x_ref   : (nb, H, W*CIN)  f32   lane layout l = w*CIN + c
    wmat_ref: (2*W*CIN + W*CEXP, W*CEXP) bf16
              rows [0,WCI)        block-diag expand weight  (BN1 scale folded)
              rows [WCI,2*WCI)    block-diag shortcut weight(BNsc scale folded)
              rows [2*WCI, ... )  block-diag pointwise weight(BN3 scale folded)
    cst_ref : (K*K*H + 3, W*CEXP) f32
              rows [16t,16(t+1))  depthwise tap t weights (BN2 scale + boundary
                                  masks folded); last 3 rows: b1, b2, b3+bsc
    o_ref   : (nb, H, W*CEXP) f32
    """
    WCI = W * CIN
    WCO = W * CEXP
    R = nb * H
    base = K * K * H

    # ---- constants: hoisted once per grid step (never re-loaded per image) ----
    b1 = cst_ref[base + 0:base + 1, :]                      # (1, WCO)
    b2 = cst_ref[base + 1:base + 2, :]
    bo = cst_ref[base + 2:base + 3, :]
    wtaps = [cst_ref[t * H:(t + 1) * H, :] for t in range(K * K)]   # (H, WCO) each

    # ---- phase 1: 1x1 expand conv on the MXU over the whole tile ----
    xb = x_ref[...].reshape(R, WCI).astype(jnp.bfloat16)
    y1_ref[...] = jnp.dot(xb, wmat_ref[0:WCI, :],
                          preferred_element_type=jnp.float32)

    # ---- phase 2: BN1 shift + ReLU + depthwise KxK + BN2 + ReLU, per image ----
    # dy taps = sublane rolls, dx taps = lane rolls; every spatial boundary mask
    # is folded into wtaps, so wrapped rows/lanes contribute exactly zero.
    def dw_body(n, carry):
        r0 = pl.multiple_of(n * H, H)
        y1n = jnp.maximum(y1_ref[pl.ds(r0, H), :] + b1, 0.0)        # (H, WCO)
        acc = None
        for dy in range(K):
            rows = _shift_rows(y1n, dy - PAD, H)
            for dx in range(K):
                tap = _shift_lanes(rows, (dx - PAD) * CEXP, WCO)
                term = tap * wtaps[dy * K + dx]
                acc = term if acc is None else acc + term
        y2 = jnp.maximum(acc + b2, 0.0)
        y2_ref[pl.ds(r0, H), :] = y2.astype(jnp.bfloat16)           # MXU operand
        return carry

    lax.fori_loop(0, nb, dw_body, 0, unroll=2 if nb % 2 == 0 else 1)

    # ---- phase 3: 1x1 pointwise + shortcut conv on the MXU over the whole tile;
    #      residual add and combined BN shifts fused into the output store ----
    y3 = jnp.dot(y2_ref[...], wmat_ref[2 * WCI:, :],
                 preferred_element_type=jnp.float32)
    # recompute the cheap bf16 view of x (keeps its live range short)
    xb2 = x_ref[...].reshape(R, WCI).astype(jnp.bfloat16)
    sc = jnp.dot(xb2, wmat_ref[WCI:2 * WCI, :],
                 preferred_element_type=jnp.float32)
    o_ref[...] = (y3 + sc + bo).reshape(nb, H, WCO)                 # lane-dense store


# ---------------- tile sizing (generation-aware) ----------------

def _pick_tile(n_images):
    """Images per grid step: large tiles amortize the ~600-cycle per-step cost.
    One step for small batches on 1-TC chips (v5e/v6e); on v7x aim for a grid
    length that is a multiple of 2 so both TensorCores are fed."""
    max_nb = 64          # 64 imgs ~ 0.25 MiB in + 0.5 MiB out per step (tiny)
    try:
        kind = jax.devices()[0].device_kind.lower()
    except Exception:
        kind = ""
    n_tc = 2 if ("v7" in kind or "7x" in kind) else 1
    nb = min(max_nb, max(1, pl.cdiv(n_images, n_tc)), n_images)
    while n_images % nb:
        nb -= 1
    return nb


# ---------------- forward wrapper ----------------

def block_forward(x_nchw, p):
    N, cin, H, W = x_nchw.shape
    assert cin == CIN
    WCI = W * CIN
    WCO = W * CEXP
    # lane-dense layout requirement: output last dim must fill the 128 lanes
    assert WCO % 128 == 0 and H % 8 == 0

    # NCHW -> (N, H, W*CIN).  In a full network you would keep activations in
    # this lane-dense layout across blocks and drop these transposes entirely.
    xg = jnp.transpose(x_nchw, (0, 2, 3, 1)).astype(jnp.float32).reshape(N, H, WCI)

    # --- block-diagonal 1x1 weights (BN scale folded), one bf16 slab for the MXU ---
    eye_w = jnp.eye(W, dtype=jnp.float32)
    w_exp = jnp.kron(eye_w, p["w1f"])            # (W*CIN,  W*CEXP)
    w_sc = jnp.kron(eye_w, p["wscf"])            # (W*CIN,  W*CEXP)
    w_pw = jnp.kron(eye_w, p["w3f"])             # (W*CEXP, W*CEXP)
    wmat = jnp.concatenate([w_exp, w_sc, w_pw], axis=0).astype(jnp.bfloat16)

    # --- depthwise taps with BN2 scale + both spatial boundary masks folded in,
    #     plus the three lane-tiled bias rows; one f32 constant slab ---
    hh = jnp.arange(H)
    ww = jnp.arange(W)
    taps = []
    for dy in range(K):
        hmask = ((hh + dy - PAD >= 0) & (hh + dy - PAD < H)).astype(jnp.float32)
        for dx in range(K):
            wmask = ((ww + dx - PAD >= 0) & (ww + dx - PAD < W)).astype(jnp.float32)
            lane = (wmask[:, None] * p["wdwf"][dy * K + dx][None, :]).reshape(WCO)
            taps.append(hmask[:, None] * lane[None, :])              # (H, WCO)
    b1v = jnp.tile(p["b1"], W).reshape(1, WCO)
    b2v = jnp.tile(p["b2"], W).reshape(1, WCO)
    bov = jnp.tile(p["b3"] + p["bsc"], W).reshape(1, WCO)
    cst = jnp.concatenate(taps + [b1v, b2v, bov], axis=0)            # (K*K*H+3, WCO)

    nb = _pick_tile(N)
    grid = (N // nb,)
    kernel = functools.partial(_block_kernel, nb, H, W)

    out = pl.pallas_call(
        kernel,
        out_shape=jax.ShapeDtypeStruct((N, H, WCO), jnp.float32),
        grid=grid,
        in_specs=[
            pl.BlockSpec((nb, H, WCI), lambda b: (b, 0, 0)),
            pl.BlockSpec(wmat.shape, lambda b: (0, 0)),
            pl.BlockSpec(cst.shape, lambda b: (0, 0)),
        ],
        out_specs=pl.BlockSpec((nb, H, WCO), lambda b: (b, 0, 0)),
        scratch_shapes=[
            pltpu.VMEM((nb * H, WCO), jnp.float32),    # y1 (pre-bias expand output)
            pltpu.VMEM((nb * H, WCO), jnp.bfloat16),   # y2 (pointwise MXU operand)
        ],
        compiler_params=pltpu.CompilerParams(
            dimension_semantics=("parallel",),
            vmem_limit_bytes=32 * 1024 * 1024),
    )(xg, wmat, cst)

    out = out.reshape(N, H, W, COUT)                   # un-fold lanes -> (w, c)
    return jnp.transpose(out, (0, 3, 1, 2))            # back to NCHW


# ---------------- deterministic parameter init (BN folded, eval mode) ----------------

def make_params(key):
    ks = jax.random.split(key, 8)

    def folded_bn(k, c):
        k1, k2, k3, k4 = jax.random.split(k, 4)
        gamma = jax.random.uniform(k1, (c,), jnp.float32, 0.5, 1.5)
        beta = jax.random.normal(k2, (c,), jnp.float32) * 0.1
        mean = jax.random.normal(k3, (c,), jnp.float32) * 0.1
        var = jax.random.uniform(k4, (c,), jnp.float32, 0.5, 1.5)
        scale = gamma / jnp.sqrt(var + BN_EPS)
        shift = beta - mean * scale
        return scale, shift

    def snap_bf16(w):
        # 1x1 weights are consumed by the MXU in bf16; store them at bf16
        # resolution so kernel and reference share exactly representable values.
        return w.astype(jnp.bfloat16).astype(jnp.float32)

    w1 = jax.random.normal(ks[0], (CIN, CEXP), jnp.float32) * 0.3
    wdw = jax.random.normal(ks[1], (K * K, CEXP), jnp.float32) * 0.3   # depthwise taps
    w3 = jax.random.normal(ks[2], (CEXP, COUT), jnp.float32) * 0.3
    wsc = jax.random.normal(ks[3], (CIN, COUT), jnp.float32) * 0.3
    s1, b1 = folded_bn(ks[4], CEXP)
    s2, b2 = folded_bn(ks[5], CEXP)
    s3, b3 = folded_bn(ks[6], COUT)
    ssc, bsc = folded_bn(ks[7], COUT)

    return dict(
        w1f=snap_bf16(w1 * s1[None, :]),       # conv1 weight, BN1 scale folded
        b1=b1,
        wdwf=wdw * s2[None, :],                # depthwise weight, BN2 scale folded (f32 VPU path)
        b2=b2,
        w3f=snap_bf16(w3 * s3[None, :]),       # conv3 weight, BN3 scale folded
        b3=b3,
        wscf=snap_bf16(wsc * ssc[None, :]),    # shortcut conv weight, BN scale folded
        bsc=bsc,
    )


# ---------------- pure-JAX reference (exact f32, same folded-BN math) ----------------

def reference(x_nchw, p):
    x = jnp.transpose(x_nchw, (0, 2, 3, 1)).astype(jnp.float32)   # NHWC
    _, H, W, _ = x.shape
    hp = jax.lax.Precision.HIGHEST
    y1 = jnp.maximum(
        jnp.einsum('nhwc,cd->nhwd', x, p["w1f"], precision=hp) + p["b1"], 0.0)
    y1p = jnp.pad(y1, ((0, 0), (PAD, PAD), (PAD, PAD), (0, 0)))
    acc = jnp.zeros_like(y1)
    for dy in range(K):
        for dx in range(K):
            acc = acc + y1p[:, dy:dy + H, dx:dx + W, :] * p["wdwf"][dy * K + dx]
    y2 = jnp.maximum(acc + p["b2"], 0.0)
    y3 = jnp.einsum('nhwc,cd->nhwd', y2, p["w3f"], precision=hp) + p["b3"]
    sc = jnp.einsum('nhwc,cd->nhwd', x, p["wscf"], precision=hp) + p["bsc"]
    return jnp.transpose(y3 + sc, (0, 3, 1, 2))


if __name__ == "__main__":
    key = jax.random.PRNGKey(0)
    kx, kp = jax.random.split(key)
    x = jax.random.normal(kx, (2, CIN, 16, 16), jnp.float32)       # NCHW input
    # Test input at bf16 resolution (exactly representable) so the expand/
    # shortcut MXU matmuls incur no input-rounding error vs. the f32 reference.
    x = x.astype(jnp.bfloat16).astype(jnp.float32)
    params = make_params(kp)

    out = jax.block_until_ready(block_forward(x, params))

    ref = reference(x, params)
    assert out.shape == (2, COUT, 16, 16)
    # Only kernel/reference numerical difference: bf16 rounding of the depthwise
    # output feeding the pointwise MXU matmul (f32 accumulation everywhere);
    # tolerance is a few bf16 ulps of the O(1-10) pre-activation sums.
    assert jnp.allclose(out, ref, atol=4e-2, rtol=1e-2)
    print("KERNEL_OK")
</pallas_src>

<mosaic_0001>
module attributes {stable_mosaic.version = 11 : i64} {
  func.func @_block_kernel(%arg0: i32, %arg1: memref<2x16x64xf32, #tpu.memory_space<vmem>>, %arg2: memref<256x128xbf16, #tpu.memory_space<vmem>>, %arg3: memref<147x128xf32, #tpu.memory_space<vmem>>, %arg4: memref<2x16x128xf32, #tpu.memory_space<vmem>>, %arg5: memref<32x128xf32, #tpu.memory_space<vmem>>, %arg6: memref<32x128xbf16, #tpu.memory_space<vmem>>) attributes {dimension_semantics = [#tpu.dimension_semantics<parallel>], iteration_bounds = array<i64: 1>, scalar_prefetch = 0 : i64, scratch_operands = 2 : i64, tpu.core_type = #tpu.core_type<tc>, window_params = [{transform_indices = @transform_0, window_bounds = array<i64: 2, 16, 64>}, {pipeline_mode = #tpu.pipeline_mode<synchronous>, transform_indices = @transform_1, window_bounds = array<i64: 256, 128>}, {pipeline_mode = #tpu.pipeline_mode<synchronous>, transform_indices = @transform_2, window_bounds = array<i64: 147, 128>}, {transform_indices = @transform_3, window_bounds = array<i64: 2, 16, 128>}]} {
    %c144 = arith.constant 144 : index
    %c0 = arith.constant 0 : index
    %0 = vector.load %arg3[%c144, %c0] : memref<147x128xf32, #tpu.memory_space<vmem>>, vector<1x128xf32>
    %c145 = arith.constant 145 : index
    %c0_0 = arith.constant 0 : index
    %1 = vector.load %arg3[%c145, %c0_0] : memref<147x128xf32, #tpu.memory_space<vmem>>, vector<1x128xf32>
    %c146 = arith.constant 146 : index
    %c0_1 = arith.constant 0 : index
    %2 = vector.load %arg3[%c146, %c0_1] : memref<147x128xf32, #tpu.memory_space<vmem>>, vector<1x128xf32>
    %c0_2 = arith.constant 0 : index
    %c0_3 = arith.constant 0 : index
    %3 = vector.load %arg3[%c0_2, %c0_3] : memref<147x128xf32, #tpu.memory_space<vmem>>, vector<16x128xf32>
    %c16 = arith.constant 16 : index
    %c0_4 = arith.constant 0 : index
    %4 = vector.load %arg3[%c16, %c0_4] : memref<147x128xf32, #tpu.memory_space<vmem>>, vector<16x128xf32>
    %c32 = arith.constant 32 : index
    %c0_5 = arith.constant 0 : index
    %5 = vector.load %arg3[%c32, %c0_5] : memref<147x128xf32, #tpu.memory_space<vmem>>, vector<16x128xf32>
    %c48 = arith.constant 48 : index
    %c0_6 = arith.constant 0 : index
    %6 = vector.load %arg3[%c48, %c0_6] : memref<147x128xf32, #tpu.memory_space<vmem>>, vector<16x128xf32>
    %c64 = arith.constant 64 : index
    %c0_7 = arith.constant 0 : index
    %7 = vector.load %arg3[%c64, %c0_7] : memref<147x128xf32, #tpu.memory_space<vmem>>, vector<16x128xf32>
    %c80 = arith.constant 80 : index
    %c0_8 = arith.constant 0 : index
    %8 = vector.load %arg3[%c80, %c0_8] : memref<147x128xf32, #tpu.memory_space<vmem>>, vector<16x128xf32>
    %c96 = arith.constant 96 : index
    %c0_9 = arith.constant 0 : index
    %9 = vector.load %arg3[%c96, %c0_9] : memref<147x128xf32, #tpu.memory_space<vmem>>, vector<16x128xf32>
    %c112 = arith.constant 112 : index
    %c0_10 = arith.constant 0 : index
    %10 = vector.load %arg3[%c112, %c0_10] : memref<147x128xf32, #tpu.memory_space<vmem>>, vector<16x128xf32>
    %c128 = arith.constant 128 : index
    %c0_11 = arith.constant 0 : index
    %11 = vector.load %arg3[%c128, %c0_11] : memref<147x128xf32, #tpu.memory_space<vmem>>, vector<16x128xf32>
    %c0_12 = arith.constant 0 : index
    %c0_13 = arith.constant 0 : index
    %c0_14 = arith.constant 0 : index
    %12 = vector.load %arg1[%c0_12, %c0_13, %c0_14] : memref<2x16x64xf32, #tpu.memory_space<vmem>>, vector<2x16x64xf32>
    %13 = vector.shape_cast %12 : vector<2x16x64xf32> to vector<32x64xf32>
    %14 = arith.truncf %13 : vector<32x64xf32> to vector<32x64xbf16>
    %c0_15 = arith.constant 0 : index
    %c0_16 = arith.constant 0 : index
    %15 = vector.load %arg2[%c0_15, %c0_16] : memref<256x128xbf16, #tpu.memory_space<vmem>>, vector<64x128xbf16>
    %cst = arith.constant dense<0.000000e+00> : vector<32x128xf32>
    %16 = tpu.matmul %14, %15, %cst {dimension_numbers = #tpu.dot_dimension_numbers<[1], [0], [0], [1], [0, 0, 1, 1], [], []>} : vector<32x64xbf16>, vector<64x128xbf16>, vector<32x128xf32> -> vector<32x128xf32>
    %c0_17 = arith.constant 0 : index
    %c0_18 = arith.constant 0 : index
    %17 = vector.load %arg5[%c0_17, %c0_18] : memref<32x128xf32, #tpu.memory_space<vmem>>, vector<32x128xf32>
    tpu.vector_store %arg5[%c0_17, %c0_18], %16 {strides = array<i32>} : memref<32x128xf32, #tpu.memory_space<vmem>>, vector<32x128xf32>,
    %c0_i32 = arith.constant 0 : i32
    %c16_i32 = arith.constant 16 : i32
    %18 = arith.muli %c0_i32, %c16_i32 : i32
    %19 = tpu.assume_multiple %18, 16 : i32
    %20 = arith.index_cast %19 : i32 to index
    %c0_19 = arith.constant 0 : index
    %21 = vector.load %arg5[%20, %c0_19] : memref<32x128xf32, #tpu.memory_space<vmem>>, vector<16x128xf32>
    %22 = vector.broadcast %0 : vector<1x128xf32> to vector<16x128xf32>
    %23 = arith.addf %21, %22 : vector<16x128xf32>
    %cst_20 = arith.constant 0.000000e+00 : f32
    %24 = vector.broadcast %cst_20 : f32 to vector<16x128xf32>
    %25 = arith.maximumf %23, %24 : vector<16x128xf32>
    %c1_i32 = arith.constant 1 : i32
    %26 = tpu.dynamic_rotate %25 by %c1_i32 dim 0 : vector<16x128xf32>, i32 -> vector<16x128xf32>
    %c8_i32 = arith.constant 8 : i32
    %27 = tpu.dynamic_rotate %26 by %c8_i32 dim 1 : vector<16x128xf32>, i32 -> vector<16x128xf32>
    %28 = arith.mulf %27, %3 : vector<16x128xf32>
    %29 = arith.mulf %26, %4 : vector<16x128xf32>
    %30 = arith.addf %28, %29 : vector<16x128xf32>
    %c120_i32 = arith.constant 120 : i32
    %31 = tpu.dynamic_rotate %26 by %c120_i32 dim 1 : vector<16x128xf32>, i32 -> vector<16x128xf32>
    %32 = arith.mulf %31, %5 : vector<16x128xf32>
    %33 = arith.addf %30, %32 : vector<16x128xf32>
    %c8_i32_21 = arith.constant 8 : i32
    %34 = tpu.dynamic_rotate %25 by %c8_i32_21 dim 1 : vector<16x128xf32>, i32 -> vector<16x128xf32>
    %35 = arith.mulf %34, %6 : vector<16x128xf32>
    %36 = arith.addf %33, %35 : vector<16x128xf32>
    %37 = arith.mulf %25, %7 : vector<16x128xf32>
    %38 = arith.addf %36, %37 : vector<16x128xf32>
    %c120_i32_22 = arith.constant 120 : i32
    %39 = tpu.dynamic_rotate %25 by %c120_i32_22 dim 1 : vector<16x128xf32>, i32 -> vector<16x128xf32>
    %40 = arith.mulf %39, %8 : vector<16x128xf32>
    %41 = arith.addf %38, %40 : vector<16x128xf32>
    %c15_i32 = arith.constant 15 : i32
    %42 = tpu.dynamic_rotate %25 by %c15_i32 dim 0 : vector<16x128xf32>, i32 -> vector<16x128xf32>
    %c8_i32_23 = arith.constant 8 : i32
    %43 = tpu.dynamic_rotate %42 by %c8_i32_23 dim 1 : vector<16x128xf32>, i32 -> vector<16x128xf32>
    %44 = arith.mulf %43, %9 : vector<16x128xf32>
    %45 = arith.addf %41, %44 : vector<16x128xf32>
    %46 = arith.mulf %42, %10 : vector<16x128xf32>
    %47 = arith.addf %45, %46 : vector<16x128xf32>
    %c120_i32_24 = arith.constant 120 : i32
    %48 = tpu.dynamic_rotate %42 by %c120_i32_24 dim 1 : vector<16x128xf32>, i32 -> vector<16x128xf32>
    %49 = arith.mulf %48, %11 : vector<16x128xf32>
    %50 = arith.addf %47, %49 : vector<16x128xf32>
    %51 = vector.broadcast %1 : vector<1x128xf32> to vector<16x128xf32>
    %52 = arith.addf %50, %51 : vector<16x128xf32>
    %cst_25 = arith.constant 0.000000e+00 : f32
    %53 = vector.broadcast %cst_25 : f32 to vector<16x128xf32>
    %54 = arith.maximumf %52, %53 : vector<16x128xf32>
    %55 = arith.truncf %54 : vector<16x128xf32> to vector<16x128xbf16>
    %56 = arith.index_cast %19 : i32 to index
    %c0_26 = arith.constant 0 : index
    %57 = vector.load %arg6[%56, %c0_26] : memref<32x128xbf16, #tpu.memory_space<vmem>>, vector<16x128xbf16>
    tpu.vector_store %arg6[%56, %c0_26], %55 {strides = array<i32>} : memref<32x128xbf16, #tpu.memory_space<vmem>>, vector<16x128xbf16>,
    %c1_i32_27 = arith.constant 1 : i32
    %c16_i32_28 = arith.constant 16 : i32
    %58 = arith.muli %c1_i32_27, %c16_i32_28 : i32
    %59 = tpu.assume_multiple %58, 16 : i32
    %60 = arith.index_cast %59 : i32 to index
    %c0_29 = arith.constant 0 : index
    %61 = vector.load %arg5[%60, %c0_29] : memref<32x128xf32, #tpu.memory_space<vmem>>, vector<16x128xf32>
    %62 = vector.broadcast %0 : vector<1x128xf32> to vector<16x128xf32>
    %63 = arith.addf %61, %62 : vector<16x128xf32>
    %cst_30 = arith.constant 0.000000e+00 : f32
    %64 = vector.broadcast %cst_30 : f32 to vector<16x128xf32>
    %65 = arith.maximumf %63, %64 : vector<16x128xf32>
    %c1_i32_31 = arith.constant 1 : i32
    %66 = tpu.dynamic_rotate %65 by %c1_i32_31 dim 0 : vector<16x128xf32>, i32 -> vector<16x128xf32>
    %c8_i32_32 = arith.constant 8 : i32
    %67 = tpu.dynamic_rotate %66 by %c8_i32_32 dim 1 : vector<16x128xf32>, i32 -> vector<16x128xf32>
    %68 = arith.mulf %67, %3 : vector<16x128xf32>
    %69 = arith.mulf %66, %4 : vector<16x128xf32>
    %70 = arith.addf %68, %69 : vector<16x128xf32>
    %c120_i32_33 = arith.constant 120 : i32
    %71 = tpu.dynamic_rotate %66 by %c120_i32_33 dim 1 : vector<16x128xf32>, i32 -> vector<16x128xf32>
    %72 = arith.mulf %71, %5 : vector<16x128xf32>
    %73 = arith.addf %70, %72 : vector<16x128xf32>
    %c8_i32_34 = arith.constant 8 : i32
    %74 = tpu.dynamic_rotate %65 by %c8_i32_34 dim 1 : vector<16x128xf32>, i32 -> vector<16x128xf32>
    %75 = arith.mulf %74, %6 : vector<16x128xf32>
    %76 = arith.addf %73, %75 : vector<16x128xf32>
    %77 = arith.mulf %65, %7 : vector<16x128xf32>
    %78 = arith.addf %76, %77 : vector<16x128xf32>
    %c120_i32_35 = arith.constant 120 : i32
    %79 = tpu.dynamic_rotate %65 by %c120_i32_35 dim 1 : vector<16x128xf32>, i32 -> vector<16x128xf32>
    %80 = arith.mulf %79, %8 : vector<16x128xf32>
    %81 = arith.addf %78, %80 : vector<16x128xf32>
    %c15_i32_36 = arith.constant 15 : i32
    %82 = tpu.dynamic_rotate %65 by %c15_i32_36 dim 0 : vector<16x128xf32>, i32 -> vector<16x128xf32>
    %c8_i32_37 = arith.constant 8 : i32
    %83 = tpu.dynamic_rotate %82 by %c8_i32_37 dim 1 : vector<16x128xf32>, i32 -> vector<16x128xf32>
    %84 = arith.mulf %83, %9 : vector<16x128xf32>
    %85 = arith.addf %81, %84 : vector<16x128xf32>
    %86 = arith.mulf %82, %10 : vector<16x128xf32>
    %87 = arith.addf %85, %86 : vector<16x128xf32>
    %c120_i32_38 = arith.constant 120 : i32
    %88 = tpu.dynamic_rotate %82 by %c120_i32_38 dim 1 : vector<16x128xf32>, i32 -> vector<16x128xf32>
    %89 = arith.mulf %88, %11 : vector<16x128xf32>
    %90 = arith.addf %87, %89 : vector<16x128xf32>
    %91 = vector.broadcast %1 : vector<1x128xf32> to vector<16x128xf32>
    %92 = arith.addf %90, %91 : vector<16x128xf32>
    %cst_39 = arith.constant 0.000000e+00 : f32
    %93 = vector.broadcast %cst_39 : f32 to vector<16x128xf32>
    %94 = arith.maximumf %92, %93 : vector<16x128xf32>
    %95 = arith.truncf %94 : vector<16x128xf32> to vector<16x128xbf16>
    %96 = arith.index_cast %59 : i32 to index
    %c0_40 = arith.constant 0 : index
    %97 = vector.load %arg6[%96, %c0_40] : memref<32x128xbf16, #tpu.memory_space<vmem>>, vector<16x128xbf16>
    tpu.vector_store %arg6[%96, %c0_40], %95 {strides = array<i32>} : memref<32x128xbf16, #tpu.memory_space<vmem>>, vector<16x128xbf16>,
    %c2_i32 = arith.constant 2 : i32
    %c0_41 = arith.constant 0 : index
    %c0_42 = arith.constant 0 : index
    %98 = vector.load %arg6[%c0_41, %c0_42] : memref<32x128xbf16, #tpu.memory_space<vmem>>, vector<32x128xbf16>
    %c128_43 = arith.constant 128 : index
    %c0_44 = arith.constant 0 : index
    %99 = vector.load %arg2[%c128_43, %c0_44] : memref<256x128xbf16, #tpu.memory_space<vmem>>, vector<128x128xbf16>
    %cst_45 = arith.constant dense<0.000000e+00> : vector<32x128xf32>
    %100 = tpu.matmul %98, %99, %cst_45 {dimension_numbers = #tpu.dot_dimension_numbers<[1], [0], [0], [1], [0, 0, 1, 1], [], []>} : vector<32x128xbf16>, vector<128x128xbf16>, vector<32x128xf32> -> vector<32x128xf32>
    %c0_46 = arith.constant 0 : index
    %c0_47 = arith.constant 0 : index
    %c0_48 = arith.constant 0 : index
    %101 = vector.load %arg1[%c0_46, %c0_47, %c0_48] : memref<2x16x64xf32, #tpu.memory_space<vmem>>, vector<2x16x64xf32>
    %102 = vector.shape_cast %101 : vector<2x16x64xf32> to vector<32x64xf32>
    %103 = arith.truncf %102 : vector<32x64xf32> to vector<32x64xbf16>
    %c64_49 = arith.constant 64 : index
    %c0_50 = arith.constant 0 : index
    %104 = vector.load %arg2[%c64_49, %c0_50] : memref<256x128xbf16, #tpu.memory_space<vmem>>, vector<64x128xbf16>
    %cst_51 = arith.constant dense<0.000000e+00> : vector<32x128xf32>
    %105 = tpu.matmul %103, %104, %cst_51 {dimension_numbers = #tpu.dot_dimension_numbers<[1], [0], [0], [1], [0, 0, 1, 1], [], []>} : vector<32x64xbf16>, vector<64x128xbf16>, vector<32x128xf32> -> vector<32x128xf32>
    %106 = arith.addf %100, %105 : vector<32x128xf32>
    %107 = vector.broadcast %2 : vector<1x128xf32> to vector<32x128xf32>
    %108 = arith.addf %106, %107 : vector<32x128xf32>
    %109 = vector.shape_cast %108 : vector<32x128xf32> to vector<2x16x128xf32>
    %c0_52 = arith.constant 0 : index
    %c0_53 = arith.constant 0 : index
    %c0_54 = arith.constant 0 : index
    %110 = vector.load %arg4[%c0_52, %c0_53, %c0_54] : memref<2x16x128xf32, #tpu.memory_space<vmem>>, vector<2x16x128xf32>
    tpu.vector_store %arg4[%c0_52, %c0_53, %c0_54], %109 {strides = array<i32>} : memref<2x16x128xf32, #tpu.memory_space<vmem>>, vector<2x16x128xf32>,
    return
  }
  func.func @transform_0(%arg0: i32) -> (i32, i32, i32) {
    %c0_i32 = arith.constant 0 : i32
    %c0_i32_0 = arith.constant 0 : i32
    %c0_i32_1 = arith.constant 0 : i32
    return %arg0, %c0_i32, %c0_i32_0 : i32, i32, i32
  }
  func.func @transform_1(%arg0: i32) -> (i32, i32) {
    %c0_i32 = arith.constant 0 : i32
    %c0_i32_0 = arith.constant 0 : i32
    %c0_i32_1 = arith.constant 0 : i32
    return %c0_i32, %c0_i32_0 : i32, i32
  }
  func.func @transform_2(%arg0: i32) -> (i32, i32) {
    %c0_i32 = arith.constant 0 : i32
    %c0_i32_0 = arith.constant 0 : i32
    %c0_i32_1 = arith.constant 0 : i32
    return %c0_i32, %c0_i32_0 : i32, i32
  }
  func.func @transform_3(%arg0: i32) -> (i32, i32, i32) {
    %c0_i32 = arith.constant 0 : i32
    %c0_i32_0 = arith.constant 0 : i32
    %c0_i32_1 = arith.constant 0 : i32
    return %arg0, %c0_i32, %c0_i32_0 : i32, i32, i32
  }
}

</mosaic_0001>

<bundles_post_ra>
// kernel: tpu_custom_call.1
= control target key start
LH: loop header
LB: loop body
LE: loop exit
PB: predicated region body
PF: predicated region fallthrough
CT: control target
= control target key end

     0   :  { %8 = vsyncpa [#allocation5], 0  ;;  %s952_s0 = inlined_call_operand.hbm [shape: f32[2,16,64], index: 0, kind: input, shape index: {}]   ;;  %s953_s1 = inlined_call_operand.hbm [shape: bf16[256,128], index: 1, kind: input, shape index: {}]   ;;  %s954_s2 = inlined_call_operand.hbm [shape: f32[147,128], index: 2, kind: input, shape index: {}]   ;;  %s955_s3 = inlined_call_operand.hbm [shape: f32[2,16,128], index: 3, kind: output, shape index: {}]  }
   0x1   :  { %9 = vsyncpa [#allocation8], 0  ;;  %s28_s14 = sshll.u32 %s953_s1, 4  ;;  %s29_s14 = int_to_ptr.hbm [resolvable:$true] %s28_s14 }
   0x2   :  { %10 = vsyncpa [#allocation6], 0  ;;  %s737_s15 = smov [#allocation7]   ;;  %s15_s19 = sshll.u32 %s952_s0, 4  ;;  %s16_s19 = int_to_ptr.hbm [resolvable:$true] %s15_s19 }
   0x3   :  { %s30_s16 = sshll.u32 %s737_s15, 4  ;;  %s738_s20 = smov 64   ;;  %s31_s16 = int_to_ptr.vmem [resolvable:$true] %s30_s16 }
   0x4   :  { %s739_s21 = smov 4   ;;  %s740_s22 = smov [#allocation4]  }
   0x5   :  { %36 = dma.hbm_to_vmem [thread:$0]  %s29_s14, 2048, %s31_s16, [#allocation8], %s738_s20, %s738_s20, %s739_s21  }
   0x6   :  { %s17_s23 = sshll.u32 %s740_s22, 4  ;;  %s741_s24 = smov 128   ;;  %s18_s23 = int_to_ptr.vmem [resolvable:$true] %s17_s23 }
   0x7   :  { %s742_s25 = smov 8   ;;  %s41_s27 = sshll.u32 %s954_s2, 4  ;;  %s42_s27 = int_to_ptr.hbm [resolvable:$true] %s41_s27 }
   0x8   :  { %23 = dma.hbm_to_vmem [thread:$0]  %s16_s19, 512, %s18_s23, [#allocation5], %s741_s24, %s741_s24, %s742_s25  }
   0x9   :  { %s743_s28 = smov [#allocation9]  }
   0xa   :  { %s43_s0 = sshll.u32 %s743_s28, 4  ;;  %s44_s0 = int_to_ptr.vmem [resolvable:$true] %s43_s0 }
   0xb   :  { %49 = dma.hbm_to_vmem [thread:$0]  %s42_s27, 2432, %s44_s0, [#allocation8], %s741_s24, %s741_s24, %s742_s25  }
   0xc   :  { %731 = dma.done.wait [#allocation5], 512  }
   0xd   :  { %732 = vsyncadd [#allocation5], 4294966784 }
   0xe   :  { %733 = dma.done.wait [#allocation8], 4480  }
   0xf   :  { %734 = vsyncadd [#allocation8], 4294962816  ;;  %v590_v0 = vld [vmem:[#allocation7 + $0x18] sm:$0xff]  ;;  %v589_v1 = vld [vmem:[#allocation7 + $0x10] sm:$0xff]  ;;  %vm122_vm0 = vcmask 523264   ;;  %v161_v14 = vlaneseq  ;;  %s744_s2 = smov 120  }
  0x10   :  { %133 = vmatpush.bf16.msra.mxu0 %v590_v0  ;;  %v588_v2 = vld [vmem:[#allocation7 + $0x8] sm:$0xff]  ;;  %v587_v3 = vld [vmem:[#allocation7] sm:$0xff]  ;;  %v86_v7 = vld [vmem:[#allocation4 + $0x10] sm:$0xff]  ;;  %s745_s29 = smov [#allocation10]   ;;  %s497_s6 = sshll.u32 %s955_s3, 4  ;;  %s498_s6 = int_to_ptr.hbm [resolvable:$true] %s497_s6 }
  0x11   :  { %v84_v4 = vld [vmem:[#allocation4] sm:$0xff]  ;;  %v85_v5 = vld [vmem:[#allocation4 + $0x8] sm:$0xff]  ;;  %v87_v8 = vld [vmem:[#allocation4 + $0x18] sm:$0xff]  ;;  %v162_v16 = vshrl.u32 %v161_v14, 7  ;;  %s495_s30 = sshll.u32 %s745_s29, 4  ;;  %s496_s30 = int_to_ptr.vmem [resolvable:$true] %s495_s30 }
  0x12   :  { %v781_v6 = vpack.c.bf16 %v85_v5, %v84_v4  ;;  %v785_v9 = vpack.c.bf16 %v87_v8, %v86_v7  ;;  %v632_v10 = vld [vmem:[#allocation9 + $0x90] ss:$0 sm:$0xff]  ;;  %v600_v47 = vld [vmem:[#allocation7 + $0x78] sm:$0xff]  ;;  %v877_v49 = vld [vmem:[#allocation9] sm:$0xff] }
  0x13   :  { %vm163_vm1 = vcmp.lt.s32.totalorder %v162_v16, 1  ;;  %vm206_vm2 = vcmp.lt.s32.totalorder %v162_v16, 7  ;;  %463 = vmatpush.bf16.msra.mxu2 %v600_v47  ;;  %615 = vmatpush.bf16.msra.mxu3 %v600_v47  ;;  %v875_v48 = vld [vmem:[#allocation9 + $0x10] sm:$0xff]  ;;  %v879_v51 = vld [vmem:[#allocation9 + $0x20] sm:$0xff]  ;;  %v604_v57 = vld [vmem:[#allocation7 + $0x38] sm:$0xff] }
  0x14   :  { %134 = vmatpush.bf16.msra.mxu0 %v589_v1  ;;  %v599_v50 = vld [vmem:[#allocation7 + $0x70] sm:$0xff]  ;;  %388 = vmatpush.bf16.msra.mxu1 %v604_v57  ;;  %v598_v61 = vld [vmem:[#allocation7 + $0x68] sm:$0xff]  ;;  %v888_v62 = vld [vmem:[#allocation9 + $0x40] sm:$0xff] }
  0x15   :  { %v885_v58 = vld [vmem:[#allocation9 + $0x30] sm:$0xff]  ;;  %v890_v63 = vld [vmem:[#allocation9 + $0x18] sm:$0xff]  ;;  %v895_v4 = vld [vmem:[#allocation9 + $0x8] sm:$0xff] }
  0x16   :  { %v597_v8 = vld [vmem:[#allocation7 + $0x60] sm:$0xff]  ;;  %v905_v16 = vld [vmem:[#allocation9 + $0x70] sm:$0xff] }
  0x17   :  { %464 = vmatpush.bf16.msra.mxu2 %v599_v50  ;;  %616 = vmatpush.bf16.msra.mxu3 %v599_v50  ;;  %v595_v50 = vld [vmem:[#allocation7 + $0x50] sm:$0xff] }
  0x18   :  { %135 = vmatpush.bf16.msra.mxu0 %v588_v2  ;;  %v603_v2 = vld [vmem:[#allocation7 + $0x30] sm:$0xff] }
  0x19   :  { %389 = vmatpush.bf16.msra.mxu1 %v603_v2 }
  0x1b   :  { %465 = vmatpush.bf16.msra.mxu2 %v598_v61  ;;  %617 = vmatpush.bf16.msra.mxu3 %v598_v61 }
  0x1c   :  { %136 = vmatpush.bf16.msra.mxu0 %v587_v3  ;;  %v893_v3 = vld [vmem:[#allocation9 + $0x50] sm:$0xff] }
  0x1f   :  { %527 = vmatmul.msk.bf16.vlgmr.msra.gmra.mxu0 %vm122_vm0, %v781_v6  ;;  %466 = vmatpush.bf16.msra.mxu2 %v597_v8 }
  0x20   :  { %618 = vmatpush.bf16.msra.mxu3 %v597_v8 }
  0x2f   :  { %528 = vmatmul.msk.bf16.gmra.mxu0 %vm122_vm0, %v785_v9 }
  0x9c   :  { %v138_v11 = vpop.f32.mrf.mxu0 }
  0x9d   :  { %v155_v12 = vadd.f32 %v632_v10, %v138_v11  ;;  %v901_v11 = vld [vmem:[#allocation9 + $0x28] sm:$0xff] }
  0x9f   :  { %v789_v13 = vmax.f32 %v155_v12, 0.0  ;;  %v903_v12 = vld [vmem:[#allocation9 + $0x60] sm:$0xff] }
  0xa1   :  { %196 = vrot.lane.b32.xlu0 %v789_v13, %s744_s2  ;;  %184 = vrot.lane.b32.xlu2 %v789_v13, %s742_s25  ;;  %v159_v19 = vrot.slane %v789_v13, 7  ;;  %v204_v24 = vrot.slane %v789_v13, 1  ;;  %v192_v5 = vmul.f32 %v789_v13, %v888_v62  ;;  %v602_v13 = vld [vmem:[#allocation7 + $0x28] sm:$0xff] }
  0xa2   :  { %390 = vmatpush.bf16.msra.mxu1 %v602_v13 }
  0xa4   :  { %v140_v15 = vpop.f32.mrf.mxu0 }
  0xa5   :  { %v156_v17 = vadd.f32 %v632_v10, %v140_v15 }
  0xa7   :  { %v795_v18 = vmax.f32 %v156_v17, 0.0 }
  0xa9   :  { %198 = vrot.lane.b32.xlu1 %v795_v18, %s744_s2  ;;  %186 = vrot.lane.b32.xlu0 %v795_v18, %s742_s25  ;;  %v160_v20 = vrot.slane %v795_v18, 7  ;;  %v205_v23 = vrot.slane %v795_v18, 1 }
  0xab   :  { %v165_v21 = vsel %vm163_vm1, %v160_v20, %v159_v19  ;;  %v808_v25 = vsel %vm206_vm2, %v204_v24, %v205_v23  ;;  %v814_v27 = vsel %vm163_vm1, %v159_v19, %v160_v20  ;;  %v827_v32 = vsel %vm206_vm2, %v205_v23, %v204_v24 }
  0xac   :  { %v143_v22 = vpop.f32.mrf.mxu0  ;;  %176 = vrot.lane.b32.xlu2 %v165_v21, %s744_s2  ;;  %v172_v54 = vmul.f32 %v165_v21, %v875_v48 }
  0xad   :  { %v241_v26 = vadd.f32 %v632_v10, %v143_v22 }
  0xaf   :  { %v818_v30 = vmax.f32 %v241_v26, 0.0 }
  0xb1   :  { %209 = vrot.lane.b32.xlu1 %v808_v25, %s742_s25  ;;  %166 = vrot.lane.b32.xlu0 %v165_v21, %s742_s25  ;;  %v245_v34 = vrot.slane %v818_v30, 7  ;;  %v287_v38 = vrot.slane %v818_v30, 1  ;;  %v909_v21 = vld [vmem:[#allocation9 + $0x38] sm:$0xff] }
  0xb4   :  { %v145_v28 = vpop.f32.mrf.mxu0  ;;  %178 = vrot.lane.b32.xlu2 %v814_v27, %s744_s2 }
  0xb5   :  { %v242_v29 = vadd.f32 %v632_v10, %v145_v28  ;;  %v173_v10 = vmul.f32 %v814_v27, %v890_v63  ;;  %v596_v28 = vld [vmem:[#allocation7 + $0x58] sm:$0xff] }
  0xb6   :  { %467 = vmatpush.bf16.msra.mxu2 %v596_v28  ;;  %619 = vmatpush.bf16.msra.mxu3 %v596_v28 }
  0xb7   :  { %v820_v31 = vmax.f32 %v242_v29, 0.0  ;;  %v217_v29 = vmul.f32 %v808_v25, %v905_v16 }
  0xb9   :  { %267 = vrot.lane.b32.xlu1 %v818_v30, %s742_s25  ;;  %168 = vrot.lane.b32.xlu0 %v814_v27, %s742_s25  ;;  %v246_v33 = vrot.slane %v820_v31, 7  ;;  %v288_v37 = vrot.slane %v820_v31, 1 }
  0xba   :  { %468 = vmatpush.bf16.msra.mxu2 %v595_v50  ;;  %620 = vmatpush.bf16.msra.mxu3 %v595_v50 }
  0xbb   :  { %v834_v35 = vsel %vm163_vm1, %v246_v33, %v245_v34  ;;  %v843_v36 = vsel %vm163_vm1, %v245_v34, %v246_v33  ;;  %v854_v39 = vsel %vm206_vm2, %v287_v38, %v288_v37  ;;  %v863_v40 = vsel %vm206_vm2, %v288_v37, %v287_v38  ;;  %v915_v33 = vld [vmem:[#allocation9 + $0x48] sm:$0xff] }
  0xbc   :  { %211 = vrot.lane.b32.xlu2 %v827_v32, %s742_s25 }
  0xc1   :  { %249 = vrot.lane.b32.xlu1 %v834_v35, %s742_s25  ;;  %281 = vrot.lane.b32.xlu0 %v820_v31, %s744_s2 }
  0xc4   :  { %279 = vrot.lane.b32.xlu2 %v818_v30, %s744_s2 }
  0xc9   :  { %251 = vrot.lane.b32.xlu1 %v843_v36, %s742_s25  ;;  %259 = vrot.lane.b32.xlu0 %v834_v35, %s744_s2 }
  0xcc   :  { %269 = vrot.lane.b32.xlu2 %v820_v31, %s742_s25 }
  0xd1   :  { %261 = vrot.lane.b32.xlu1 %v843_v36, %s744_s2  ;;  %291 = vrot.lane.b32.xlu0 %v854_v39, %s742_s25 }
  0xd4   :  { %221 = vrot.lane.b32.xlu2 %v808_v25, %s744_s2 }
  0xd9   :  { %293 = vrot.lane.b32.xlu1 %v863_v40, %s742_s25  ;;  %223 = vrot.lane.b32.xlu0 %v827_v32, %s744_s2 }
  0xdc   :  { %305 = vrot.lane.b32.xlu2 %v863_v40, %s744_s2 }
  0xe1   :  { %303 = vrot.lane.b32.xlu1 %v854_v39, %s744_s2 }
  0xfb   :  { %v185_v41 = vpop.permute.xlu2 %184 }
  0xfc   :  { %v188_v0 = vmul.f32 %v185_v41, %v885_v58  ;;  %v601_v41 = vld [vmem:[#allocation7 + $0x20] sm:$0xff] }
  0xfd   :  { %391 = vmatpush.bf16.msra.mxu1 %v601_v41 }
 0x100   :  { %545 = vmatmul.msk.bf16.vlgmr.msra.gmra.mxu1 %vm122_vm0, %v781_v6 }
 0x106   :  { %v177_v42 = vpop.permute.xlu2 %176 }
 0x107   :  { %v180_v59 = vmul.f32 %v177_v42, %v879_v51  ;;  %v77_v42 = vld [vmem:[#allocation9 + $0x58] sm:$0xff] }
 0x10e   :  { %v179_v44 = vpop.permute.xlu2 %178 }
 0x10f   :  { %v181_v22 = vmul.f32 %v179_v44, %v901_v11 }
 0x110   :  { %546 = vmatmul.msk.bf16.gmra.mxu1 %vm122_vm0, %v785_v9 }
 0x113   :  { %v197_v43 = vpop.permute.xlu0 %196 }
 0x114   :  { %v200_v17 = vmul.f32 %v197_v43, %v893_v3  ;;  %v193_v43 = vmul.f32 %v795_v18, %v915_v33  ;;  %v594_v18 = vld [vmem:[#allocation7 + $0x48] sm:$0xff] }
 0x115   :  { %469 = vmatpush.bf16.msra.mxu2 %v594_v18  ;;  %621 = vmatpush.bf16.msra.mxu3 %v594_v18 }
 0x116   :  { %v882_v55 = vpop.permute.xlu2 %211 }
 0x11b   :  { %v873_v45 = vpop.permute.xlu1 %198  ;;  %v187_v46 = vpop.permute.xlu0 %186 }
 0x11c   :  { %v189_v34 = vmul.f32 %v187_v46, %v909_v21  ;;  %v81_v46 = vld [vmem:[#allocation9 + $0x78] sm:$0xff] }
 0x11e   :  { %v280_v23 = vpop.permute.xlu2 %279 }
 0x123   :  { %v210_v52 = vpop.permute.xlu1 %209  ;;  %v167_v53 = vpop.permute.xlu0 %166 }
 0x124   :  { %v170_v56 = vmul.f32 %v167_v53, %v877_v49  ;;  %v213_v24 = vmul.f32 %v210_v52, %v903_v12  ;;  %v79_v52 = vld [vmem:[#allocation9 + $0x68] sm:$0xff] }
 0x125   :  { %v214_v57 = vmul.f32 %v882_v55, %v79_v52 }
 0x126   :  { %v174_v60 = vadd.f32 %v172_v54, %v170_v56  ;;  %v201_v54 = vmul.f32 %v873_v45, %v77_v42  ;;  %v270_v61 = vpop.permute.xlu2 %269  ;;  %v255_v45 = vmul.f32 %v834_v35, %v875_v48  ;;  %v256_v35 = vmul.f32 %v843_v36, %v890_v63 }
 0x127   :  { %v283_v48 = vmul.f32 %v280_v23, %v893_v3  ;;  %v272_v36 = vmul.f32 %v270_v61, %v909_v21  ;;  %v300_v21 = vmul.f32 %v863_v40, %v81_v46 }
 0x128   :  { %v182_v1 = vadd.f32 %v180_v59, %v174_v60  ;;  %v218_v60 = vmul.f32 %v827_v32, %v81_v46 }
 0x12a   :  { %v190_v7 = vadd.f32 %v188_v0, %v182_v1 }
 0x12b   :  { %v268_v14 = vpop.permute.xlu1 %267  ;;  %v169_v15 = vpop.permute.xlu0 %168 }
 0x12c   :  { %v194_v19 = vadd.f32 %v192_v5, %v190_v7  ;;  %v171_v20 = vmul.f32 %v169_v15, %v895_v4  ;;  %v593_v5 = vld [vmem:[#allocation7 + $0x40] sm:$0xff]  ;;  %v271_v32 = vmul.f32 %v268_v14, %v885_v58 }
 0x12d   :  { %470 = vmatpush.bf16.msra.mxu2 %v593_v5  ;;  %622 = vmatpush.bf16.msra.mxu3 %v593_v5 }
 0x12e   :  { %v175_v26 = vadd.f32 %v173_v10, %v171_v20  ;;  %v202_v27 = vadd.f32 %v200_v17, %v194_v19  ;;  %v275_v17 = vmul.f32 %v818_v30, %v888_v62  ;;  %v222_v19 = vpop.permute.xlu2 %221  ;;  %v299_v30 = vmul.f32 %v854_v39, %v905_v16 }
 0x130   :  { %v183_v37 = vadd.f32 %v181_v22, %v175_v26  ;;  %v215_v38 = vadd.f32 %v213_v24, %v202_v27  ;;  %v276_v26 = vmul.f32 %v820_v31, %v915_v33  ;;  %v633_v27 = vld [vmem:[#allocation9 + $0x91] ss:$0 sm:$0xff] }
 0x132   :  { %v191_v44 = vadd.f32 %v189_v34, %v183_v37  ;;  %v219_v47 = vadd.f32 %v217_v29, %v215_v38  ;;  %v83_v34 = vld [vmem:[#allocation9 + $0x88] sm:$0xff] }
 0x133   :  { %v250_v53 = vpop.permute.xlu1 %249  ;;  %v282_v25 = vpop.permute.xlu0 %281 }
 0x134   :  { %v195_v56 = vadd.f32 %v193_v43, %v191_v44  ;;  %v253_v0 = vmul.f32 %v250_v53, %v877_v49 }
 0x136   :  { %v203_v59 = vadd.f32 %v201_v54, %v195_v56  ;;  %v257_v8 = vadd.f32 %v255_v45, %v253_v0  ;;  %v306_v16 = vpop.permute.xlu2 %305 }
 0x137   :  { %v308_v53 = vmul.f32 %v306_v16, %v83_v34 }
 0x138   :  { %v216_v1 = vadd.f32 %v214_v57, %v203_v59 }
 0x13a   :  { %v220_v2 = vadd.f32 %v218_v60, %v216_v1 }
 0x13b   :  { %v252_v7 = vpop.permute.xlu1 %251  ;;  %v260_v6 = vpop.permute.xlu0 %259 }
 0x13c   :  { %v263_v55 = vmul.f32 %v260_v6, %v879_v51  ;;  %v254_v49 = vmul.f32 %v252_v7, %v895_v4  ;;  %v82_v4 = vld [vmem:[#allocation9 + $0x80] sm:$0xff] }
 0x13d   :  { %v225_v3 = vmul.f32 %v222_v19, %v82_v4 }
 0x13e   :  { %v265_v10 = vadd.f32 %v263_v55, %v257_v8  ;;  %v258_v22 = vadd.f32 %v256_v35, %v254_v49 }
 0x13f   :  { %v227_v28 = vadd.f32 %v225_v3, %v219_v47 }
 0x140   :  { %v273_v15 = vadd.f32 %v271_v32, %v265_v10 }
 0x141   :  { %v230_v43 = vadd.f32 %v633_v27, %v227_v28 }
 0x142   :  { %v277_v20 = vadd.f32 %v275_v17, %v273_v15 }
 0x143   :  { %v262_v13 = vpop.permute.xlu1 %261  ;;  %v292_v51 = vpop.permute.xlu0 %291  ;;  %v232_v33 = vmax.f32 %v230_v43, 0.0 }
 0x144   :  { %v264_v24 = vmul.f32 %v262_v13, %v901_v11  ;;  %v285_v58 = vadd.f32 %v283_v48, %v277_v20  ;;  %v295_v14 = vmul.f32 %v292_v51, %v903_v12  ;;  %v284_v12 = vmul.f32 %v282_v25, %v77_v42 }
 0x146   :  { %v266_v62 = vadd.f32 %v264_v24, %v258_v22  ;;  %v297_v63 = vadd.f32 %v295_v14, %v285_v58 }
 0x148   :  { %v274_v23 = vadd.f32 %v272_v36, %v266_v62  ;;  %v301_v11 = vadd.f32 %v299_v30, %v297_v63 }
 0x14a   :  { %v278_v29 = vadd.f32 %v276_v26, %v274_v23 }
 0x14b   :  { %v294_v37 = vpop.permute.xlu1 %293  ;;  %v224_v9 = vpop.permute.xlu0 %223 }
 0x14c   :  { %v286_v38 = vadd.f32 %v284_v12, %v278_v29  ;;  %v296_v41 = vmul.f32 %v294_v37, %v79_v52  ;;  %v226_v39 = vmul.f32 %v224_v9, %v83_v34 }
 0x14e   :  { %v298_v44 = vadd.f32 %v296_v41, %v286_v38  ;;  %v228_v50 = vadd.f32 %v226_v39, %v220_v2  ;;  %v634_v2 = vld [vmem:[#allocation9 + $0x92] ss:$0 sm:$0xff] }
 0x150   :  { %v302_v54 = vadd.f32 %v300_v21, %v298_v44  ;;  %v231_v31 = vadd.f32 %v633_v27, %v228_v50 }
 0x152   :  { %v310_v56 = vadd.f32 %v308_v53, %v302_v54  ;;  %v233_v47 = vmax.f32 %v231_v31, 0.0 }
 0x153   :  { %v304_v42 = vpop.permute.xlu1 %303 }
 0x154   :  { %v608_v25 = vpack.c.bf16 %v233_v47, %v232_v33  ;;  %v307_v57 = vmul.f32 %v304_v42, %v82_v4  ;;  %v312_v59 = vadd.f32 %v633_v27, %v310_v56 }
 0x156   :  { %609 = vst [vmem:[#allocation3] sm:$0xff] %v608_v25   ;;  %v309_v18 = vadd.f32 %v307_v57, %v301_v11  ;;  %v314_v61 = vmax.f32 %v312_v59, 0.0 }
 0x158   :  { %v311_v52 = vadd.f32 %v633_v27, %v309_v18 }
 0x15a   :  { %v313_v60 = vmax.f32 %v311_v52, 0.0 }
 0x15c   :  { %v613_v0 = vpack.c.bf16 %v314_v61, %v313_v60 }
 0x15d   :  { %v591_v40 = vld [vmem:[#allocation3] sm:$0xff] }
 0x15e   :  { %614 = vst [vmem:[#allocation3 + $0x8] sm:$0xff] %v613_v0   ;;  %471 = vmatmul.bf16.vlgmr.msra.gmra.mxu2 %v591_v40 }
 0x165   :  { %v592_v46 = vld [vmem:[#allocation3 + $0x8] sm:$0xff] }
 0x166   :  { %476 = vmatmul.bf16.vlgmr.msra.gmra.mxu3 %v592_v46 }
 0x17d   :  { %v393_v1 = vpop.f32.mrf.mxu1 }
 0x185   :  { %v395_v45 = vpop.f32.mrf.mxu1 }
 0x18d   :  { %v398_v8 = vpop.f32.mrf.mxu1 }
 0x195   :  { %v400_v35 = vpop.f32.mrf.mxu1 }
 0x1e1   :  { %v472_v5 = vpop.f32.mrf.mxu2 }
 0x1e2   :  { %v473_v7 = vadd.f32 %v472_v5, %v393_v1 }
 0x1e4   :  { %v483_v6 = vadd.f32 %v634_v2, %v473_v7 }
 0x1e6   :  { %487 = vst [vmem:[#allocation10] sm:$0xff] %v483_v6 }
 0x1e9   :  { %v474_v55 = vpop.f32.mrf.mxu2  ;;  %v477_v32 = vpop.f32.mrf.mxu3 }
 0x1ea   :  { %v475_v10 = vadd.f32 %v474_v55, %v395_v45  ;;  %v478_v49 = vadd.f32 %v477_v32, %v398_v8 }
 0x1ec   :  { %v484_v15 = vadd.f32 %v634_v2, %v475_v10  ;;  %v485_v17 = vadd.f32 %v634_v2, %v478_v49 }
 0x1ee   :  { %488 = vst [vmem:[#allocation10 + $0x8] sm:$0xff] %v484_v15 }
 0x1ef   :  { %489 = vst [vmem:[#allocation10 + $0x10] sm:$0xff] %v485_v17 }
 0x1f1   :  { %v479_v48 = vpop.f32.mrf.mxu3 }
 0x1f2   :  { %v480_v19 = vadd.f32 %v479_v48, %v400_v35 }
 0x1f4   :  { %v486_v20 = vadd.f32 %v634_v2, %v480_v19 }
 0x1f6   :  { %490 = vst [vmem:[#allocation10 + $0x18] sm:$0xff] %v486_v20 }
 0x1f7   :  { %503 = dma.vmem_to_hbm [thread:$0]  %s496_s30, 512, %s498_s6, [#allocation6], %s741_s24, %s741_s24, %s742_s25  }
 0x1f8   :  { %735 = dma.done.wait [#allocation6], 512  }
 0x1f9   :  { %736 = vsyncadd [#allocation6], 4294966784 }
 0x1fa   :  { %508 = vsyncpa [#allocation5], 1 }
 0x1fb   :  { %509 = vsyncpa [#allocation8], 1 }
 0x1fc   :  { %510 = vsyncpa [#allocation6], 1 }

</bundles_post_ra>
